<compile_context>
chip_gen: v6e
topology: v6e:2x2x1
jax: 0.10.0
libtpu: 0.0.40
codegen_flags: <defaults>
</compile_context>

<pallas_src>
import math
import functools

import jax
import jax.numpy as jnp
from jax import lax
from jax.experimental import pallas as pl
from jax.experimental.pallas import tpu as pltpu


def _round_up(x, m):
    return ((x + m - 1) // m) * m


def _softplus(x):
    # numerically stable log(1 + exp(x)); the exp argument is always <= 0
    return jnp.maximum(x, 0.0) + jnp.log(1.0 + jnp.exp(-jnp.abs(x)))


def _fun_g(z, t):
    # gz = 2 * ((z + 1) / 2) ** t - 1   (t is an int -> pure VPU multiplies)
    u = (z + 1.0) * 0.5
    if isinstance(t, int):
        p = lax.integer_pow(u, t)
    else:  # fallback, costs two extra EUP transcendentals per element
        p = u ** t
    return 2.0 * p - 1.0


def _sphereface2_kernel(logits_ref, tgt_ref, bias_ref, out_ref, *,
                        margin, scale, lanbuda, t, margin_type,
                        c_true, tile_c, mask_cols):
    j = pl.program_id(1)
    n_c = pl.num_programs(1)

    @pl.when(j == 0)
    def _init():
        out_ref[...] = jnp.zeros_like(out_ref)

    bias = bias_ref[0, 0]
    logits = logits_ref[...].astype(jnp.float32)          # (TB, TC)

    cos_m = math.cos(margin)
    sin_m = math.sin(margin)
    th = math.cos(math.pi - margin)
    mmm = 1.0 + math.cos(math.pi - margin)

    # Negative-branch score for every class in this tile.  The positive branch
    # is applied once per row (target column only) in the finalize step.
    if margin_type == 'A':
        # clamp keeps sqrt defined for |logits| slightly > 1 (fp noise / OOB garbage)
        sin = jnp.sqrt(jnp.maximum(1.0 - logits * logits, 0.0))
        z_n = logits * cos_m + sin * sin_m
        cos_m_theta_n = scale * _fun_g(z_n, t) + bias
    else:  # 'C'
        cos_m_theta_n = scale * (_fun_g(logits, t) + margin) + bias
    cos_n_theta = (1.0 - lanbuda) * _softplus(cos_m_theta_n)

    if mask_cols:  # only emitted when the last C-block overruns the true C
        tb, tc = logits.shape
        col_ids = j * tile_c + lax.broadcasted_iota(jnp.int32, (tb, tc), 1)
        cos_n_theta = jnp.where(col_ids < c_true, cos_n_theta, 0.0)

    # output block index is constant across j -> resident accumulator
    out_ref[...] += jnp.sum(cos_n_theta, axis=1, keepdims=True)   # (TB, 1)

    @pl.when(j == n_c - 1)
    def _finalize():
        # target-column correction: + cos_p_theta(target) - cos_n_theta(target)
        zt = tgt_ref[...].astype(jnp.float32)                     # (TB, 1)
        if margin_type == 'A':
            sin_t = jnp.sqrt(jnp.maximum(1.0 - zt * zt, 0.0))
            z_p = jnp.where(zt > th, zt * cos_m - sin_t * sin_m, zt - mmm)
            z_nt = zt * cos_m + sin_t * sin_m
            p = scale * _fun_g(z_p, t) + bias
            n = scale * _fun_g(z_nt, t) + bias
        else:
            gz = _fun_g(zt, t)
            p = scale * (gz - margin) + bias
            n = scale * (gz + margin) + bias
        cos_p_t = lanbuda * _softplus(-p)
        cos_n_t = (1.0 - lanbuda) * _softplus(n)
        out_ref[...] += cos_p_t - cos_n_t


def sphereface2_loss(logits, labels, bias, *, margin=0.2, scale=32.0,
                     lanbuda=0.7, t=3, margin_type='C'):
    """logits: (B, C) cosine logits, labels: (B,) int, bias: (1,1) f32 parameter.
    Returns the scalar SphereFace2 loss (mean over batch), matching the PyTorch
    module's forward (the 'features' entry of the input dict is unused there)."""
    B, C = logits.shape
    labels = labels.astype(jnp.int32)

    # Gather the target-class logit once in the wrapper (tiny XLA gather).
    tgt = jnp.take_along_axis(logits, labels[:, None], axis=1)        # (B, 1)
    bias2d = jnp.asarray(bias, jnp.float32).reshape(1, 1)

    # (8,128)-aligned tile sizes; large enough to amortize per-step overhead,
    # small enough to double-buffer on every TPU generation.
    tile_b = min(256, _round_up(B, 8))
    tile_c = min(2048, _round_up(C, 128))
    n_bt = pl.cdiv(B, tile_b)
    n_ct = pl.cdiv(C, tile_c)
    mask_cols = (C % tile_c) != 0     # last C-block overruns -> mask in kernel

    kernel = functools.partial(
        _sphereface2_kernel, margin=margin, scale=scale, lanbuda=lanbuda,
        t=t, margin_type=margin_type, c_true=C, tile_c=tile_c,
        mask_cols=mask_cols)

    # Output padded to a whole number of B-tiles (tiny) so output writes are
    # always fully in-bounds; extra rows are sliced off below.
    rows = pl.pallas_call(
        kernel,
        out_shape=jax.ShapeDtypeStruct((n_bt * tile_b, 1), jnp.float32),
        grid_spec=pltpu.PrefetchScalarGridSpec(
            num_scalar_prefetch=0,
            grid=(n_bt, n_ct),
            in_specs=[
                pl.BlockSpec((tile_b, tile_c), lambda i, j: (i, j)),
                pl.BlockSpec((tile_b, 1), lambda i, j: (i, 0)),
                pl.BlockSpec(memory_space=pltpu.MemorySpace.SMEM),  # scalar bias
            ],
            out_specs=pl.BlockSpec((tile_b, 1), lambda i, j: (i, 0)),
        ),
        compiler_params=pltpu.CompilerParams(
            dimension_semantics=("parallel", "arbitrary")),
    )(logits, tgt, bias2d)

    # finish the mean over the true batch (extra rows discarded)
    return jnp.sum(rows[:B, 0]) / jnp.float32(B)


def _reference_loss(logits, labels, bias, *, margin=0.2, scale=32.0,
                    lanbuda=0.7, t=3, margin_type='C'):
    # pure-JAX reference mirroring the PyTorch forward
    b = jnp.asarray(bias).reshape(-1)[0]
    cos_m = math.cos(margin)
    sin_m = math.sin(margin)
    th = math.cos(math.pi - margin)
    mmm = 1.0 + math.cos(math.pi - margin)

    def fun_g(z):
        return 2.0 * ((z + 1.0) / 2.0) ** t - 1.0

    if margin_type == 'A':
        sin = jnp.sqrt(1.0 - logits ** 2)
        p = scale * fun_g(jnp.where(logits > th, logits * cos_m - sin * sin_m,
                                    logits - mmm)) + b
        n = scale * fun_g(logits * cos_m + sin * sin_m) + b
    else:
        p = scale * (fun_g(logits) - margin) + b
        n = scale * (fun_g(logits) + margin) + b
    cp = lanbuda * jnp.log(1.0 + jnp.exp(-p))
    cn = (1.0 - lanbuda) * jnp.log(1.0 + jnp.exp(n))
    mask = jax.nn.one_hot(labels, logits.shape[1], dtype=logits.dtype)
    return (mask * cp + (1.0 - mask) * cn).sum(1).mean()


if __name__ == "__main__":
    key = jax.random.PRNGKey(0)
    bias = jnp.zeros((1, 1), dtype=jnp.float32)   # nn.Parameter(torch.zeros(1, 1))

    # (B, C) cases: the module's toy size plus a ragged multi-tile case that
    # exercises the C-axis accumulator, in-kernel column masking and the
    # non-dividing B-edge block (no wrapper-side padding anywhere).
    cases = [(8, 16), (13, 2304)]

    ok = True
    for (B, C) in cases:
        k1, k2, key = jax.random.split(key, 3)
        # logits are cosine similarities -> keep in (-1, 1)
        logits = jnp.tanh(jax.random.normal(k1, (B, C), dtype=jnp.float32))
        labels = jax.random.randint(k2, (B,), 0, C, dtype=jnp.int32)
        for mtype in ('C', 'A'):
            loss = sphereface2_loss(logits, labels, bias, margin_type=mtype)
            jax.block_until_ready(loss)
            ref = _reference_loss(logits, labels, bias, margin_type=mtype)
            if not jnp.allclose(loss, ref, rtol=1e-5, atol=1e-4):
                ok = False
                print(f"MISMATCH B={B} C={C} type={mtype}: "
                      f"kernel={float(loss):.6f} ref={float(ref):.6f}")
    if ok:
        print("KERNEL_OK")
</pallas_src>

<mosaic_0001>
module attributes {stable_mosaic.version = 11 : i64} {
  func.func @_sphereface2_kernel(%arg0: i32, %arg1: i32, %arg2: memref<8x128xf32, #tpu.memory_space<vmem>>, %arg3: memref<8x1xf32, #tpu.memory_space<vmem>>, %arg4: memref<1x1xf32, #tpu.memory_space<smem>>, %arg5: memref<8x1xf32, #tpu.memory_space<vmem>>) attributes {dimension_semantics = [#tpu.dimension_semantics<parallel>, #tpu.dimension_semantics<arbitrary>], iteration_bounds = array<i64: 1, 1>, scalar_prefetch = 0 : i64, scratch_operands = 0 : i64, tpu.core_type = #tpu.core_type<tc>, window_params = [{transform_indices = @transform_0, window_bounds = array<i64: 8, 128>}, {transform_indices = @transform_1, window_bounds = array<i64: 8, 1>}, {transform_indices = @transform_2, window_bounds = array<i64: 1, 1>}, {transform_indices = @transform_3, window_bounds = array<i64: 8, 1>}]} {
    %c0_i32 = arith.constant 0 : i32
    %0 = arith.cmpi eq, %arg1, %c0_i32 : i32
    %1 = arith.extui %0 : i1 to i32
    %c0_i32_0 = arith.constant 0 : i32
    %2 = arith.cmpi ne, %1, %c0_i32_0 : i32
    scf.if %2 {
      %cst_21 = arith.constant 0.000000e+00 : f32
      %49 = vector.broadcast %cst_21 : f32 to vector<8x1xf32>
      %c0_22 = arith.constant 0 : index
      %c0_23 = arith.constant 0 : index
      %50 = vector.load %arg5[%c0_22, %c0_23] : memref<8x1xf32, #tpu.memory_space<vmem>>, vector<8x1xf32>
      tpu.vector_store %arg5[%c0_22, %c0_23], %49 {strides = array<i32>} : memref<8x1xf32, #tpu.memory_space<vmem>>, vector<8x1xf32>,
    } else {
    }
    %c0 = arith.constant 0 : index
    %c0_1 = arith.constant 0 : index
    %3 = memref.load %arg4[%c0, %c0_1] : memref<1x1xf32, #tpu.memory_space<smem>>
    %c0_2 = arith.constant 0 : index
    %c0_3 = arith.constant 0 : index
    %4 = vector.load %arg2[%c0_2, %c0_3] : memref<8x128xf32, #tpu.memory_space<vmem>>, vector<8x128xf32>
    %cst = arith.constant 1.000000e+00 : f32
    %5 = vector.broadcast %cst : f32 to vector<8x128xf32>
    %6 = arith.addf %4, %5 : vector<8x128xf32>
    %cst_4 = arith.constant 5.000000e-01 : f32
    %7 = vector.broadcast %cst_4 : f32 to vector<8x128xf32>
    %8 = arith.mulf %6, %7 : vector<8x128xf32>
    %9 = arith.mulf %8, %8 : vector<8x128xf32>
    %10 = arith.mulf %8, %9 : vector<8x128xf32>
    %cst_5 = arith.constant 2.000000e+00 : f32
    %11 = vector.broadcast %cst_5 : f32 to vector<8x128xf32>
    %12 = arith.mulf %11, %10 : vector<8x128xf32>
    %cst_6 = arith.constant 1.000000e+00 : f32
    %13 = vector.broadcast %cst_6 : f32 to vector<8x128xf32>
    %14 = arith.subf %12, %13 : vector<8x128xf32>
    %cst_7 = arith.constant 2.000000e-01 : f32
    %15 = vector.broadcast %cst_7 : f32 to vector<8x128xf32>
    %16 = arith.addf %14, %15 : vector<8x128xf32>
    %cst_8 = arith.constant 3.200000e+01 : f32
    %17 = vector.broadcast %cst_8 : f32 to vector<8x128xf32>
    %18 = arith.mulf %17, %16 : vector<8x128xf32>
    %19 = vector.broadcast %3 : f32 to vector<8x128xf32>
    %20 = arith.addf %18, %19 : vector<8x128xf32>
    %cst_9 = arith.constant 0.000000e+00 : f32
    %21 = vector.broadcast %cst_9 : f32 to vector<8x128xf32>
    %22 = arith.maximumf %20, %21 : vector<8x128xf32>
    %23 = math.absf %20 : vector<8x128xf32>
    %cst_10 = arith.constant 0.000000e+00 : f32
    %24 = vector.broadcast %cst_10 : f32 to vector<8x128xf32>
    %25 = arith.subf %24, %23 : vector<8x128xf32>
    %26 = math.exp %25 : vector<8x128xf32>
    %cst_11 = arith.constant 1.000000e+00 : f32
    %27 = vector.broadcast %cst_11 : f32 to vector<8x128xf32>
    %28 = arith.addf %27, %26 : vector<8x128xf32>
    %29 = math.log %28 : vector<8x128xf32>
    %30 = arith.addf %22, %29 : vector<8x128xf32>
    %cst_12 = arith.constant 3.000000e-01 : f32
    %31 = vector.broadcast %cst_12 : f32 to vector<8x128xf32>
    %32 = arith.mulf %31, %30 : vector<8x128xf32>
    %c128_i32 = arith.constant 128 : i32
    %33 = arith.muli %arg1, %c128_i32 : i32
    %34 = tpu.iota {dimensions = array<i32: 1>} : vector<8x128xi32>
    %35 = vector.broadcast %33 : i32 to vector<8x128xi32>
    %36 = arith.addi %35, %34 : vector<8x128xi32>
    %c16_i32 = arith.constant 16 : i32
    %37 = vector.broadcast %c16_i32 : i32 to vector<8x128xi32>
    %38 = arith.cmpi slt, %36, %37 : vector<8x128xi32>
    %cst_13 = arith.constant 0.000000e+00 : f32
    %39 = vector.broadcast %cst_13 : f32 to vector<8x128xf32>
    %40 = arith.select %38, %32, %39 : vector<8x128xi1>, vector<8x128xf32>
    %c0_14 = arith.constant 0 : index
    %c0_15 = arith.constant 0 : index
    %41 = vector.load %arg5[%c0_14, %c0_15] : memref<8x1xf32, #tpu.memory_space<vmem>>, vector<8x1xf32>
    %cst_16 = arith.constant dense<0.000000e+00> : vector<8xf32>
    %42 = vector.multi_reduction <add>, %40, %cst_16 [1] : vector<8x128xf32> to vector<8xf32>
    %43 = vector.shape_cast %42 : vector<8xf32> to vector<8x1xf32>
    %44 = arith.addf %41, %43 : vector<8x1xf32>
    %c0_17 = arith.constant 0 : index
    %c0_18 = arith.constant 0 : index
    %45 = vector.load %arg5[%c0_17, %c0_18] : memref<8x1xf32, #tpu.memory_space<vmem>>, vector<8x1xf32>
    tpu.vector_store %arg5[%c0_17, %c0_18], %44 {strides = array<i32>} : memref<8x1xf32, #tpu.memory_space<vmem>>, vector<8x1xf32>,
    %c0_i32_19 = arith.constant 0 : i32
    %46 = arith.cmpi eq, %arg1, %c0_i32_19 : i32
    %47 = arith.extui %46 : i1 to i32
    %c0_i32_20 = arith.constant 0 : i32
    %48 = arith.cmpi ne, %47, %c0_i32_20 : i32
    scf.if %48 {
      %c0_21 = arith.constant 0 : index
      %c0_22 = arith.constant 0 : index
      %49 = vector.load %arg3[%c0_21, %c0_22] : memref<8x1xf32, #tpu.memory_space<vmem>>, vector<8x1xf32>
      %cst_23 = arith.constant 1.000000e+00 : f32
      %50 = vector.broadcast %cst_23 : f32 to vector<8x1xf32>
      %51 = arith.addf %49, %50 : vector<8x1xf32>
      %cst_24 = arith.constant 5.000000e-01 : f32
      %52 = vector.broadcast %cst_24 : f32 to vector<8x1xf32>
      %53 = arith.mulf %51, %52 : vector<8x1xf32>
      %54 = arith.mulf %53, %53 : vector<8x1xf32>
      %55 = arith.mulf %53, %54 : vector<8x1xf32>
      %cst_25 = arith.constant 2.000000e+00 : f32
      %56 = vector.broadcast %cst_25 : f32 to vector<8x1xf32>
      %57 = arith.mulf %56, %55 : vector<8x1xf32>
      %cst_26 = arith.constant 1.000000e+00 : f32
      %58 = vector.broadcast %cst_26 : f32 to vector<8x1xf32>
      %59 = arith.subf %57, %58 : vector<8x1xf32>
      %cst_27 = arith.constant 2.000000e-01 : f32
      %60 = vector.broadcast %cst_27 : f32 to vector<8x1xf32>
      %61 = arith.subf %59, %60 : vector<8x1xf32>
      %cst_28 = arith.constant 3.200000e+01 : f32
      %62 = vector.broadcast %cst_28 : f32 to vector<8x1xf32>
      %63 = arith.mulf %62, %61 : vector<8x1xf32>
      %64 = vector.broadcast %3 : f32 to vector<8x1xf32>
      %65 = arith.addf %63, %64 : vector<8x1xf32>
      %cst_29 = arith.constant 2.000000e-01 : f32
      %66 = vector.broadcast %cst_29 : f32 to vector<8x1xf32>
      %67 = arith.addf %59, %66 : vector<8x1xf32>
      %cst_30 = arith.constant 3.200000e+01 : f32
      %68 = vector.broadcast %cst_30 : f32 to vector<8x1xf32>
      %69 = arith.mulf %68, %67 : vector<8x1xf32>
      %70 = vector.broadcast %3 : f32 to vector<8x1xf32>
      %71 = arith.addf %69, %70 : vector<8x1xf32>
      %cst_31 = arith.constant 0.000000e+00 : f32
      %72 = vector.broadcast %cst_31 : f32 to vector<8x1xf32>
      %73 = arith.subf %72, %65 : vector<8x1xf32>
      %cst_32 = arith.constant 0.000000e+00 : f32
      %74 = vector.broadcast %cst_32 : f32 to vector<8x1xf32>
      %75 = arith.maximumf %73, %74 : vector<8x1xf32>
      %76 = math.absf %73 : vector<8x1xf32>
      %cst_33 = arith.constant 0.000000e+00 : f32
      %77 = vector.broadcast %cst_33 : f32 to vector<8x1xf32>
      %78 = arith.subf %77, %76 : vector<8x1xf32>
      %79 = math.exp %78 : vector<8x1xf32>
      %cst_34 = arith.constant 1.000000e+00 : f32
      %80 = vector.broadcast %cst_34 : f32 to vector<8x1xf32>
      %81 = arith.addf %80, %79 : vector<8x1xf32>
      %82 = math.log %81 : vector<8x1xf32>
      %83 = arith.addf %75, %82 : vector<8x1xf32>
      %cst_35 = arith.constant 0.699999988 : f32
      %84 = vector.broadcast %cst_35 : f32 to vector<8x1xf32>
      %85 = arith.mulf %84, %83 : vector<8x1xf32>
      %cst_36 = arith.constant 0.000000e+00 : f32
      %86 = vector.broadcast %cst_36 : f32 to vector<8x1xf32>
      %87 = arith.maximumf %71, %86 : vector<8x1xf32>
      %88 = math.absf %71 : vector<8x1xf32>
      %cst_37 = arith.constant 0.000000e+00 : f32
      %89 = vector.broadcast %cst_37 : f32 to vector<8x1xf32>
      %90 = arith.subf %89, %88 : vector<8x1xf32>
      %91 = math.exp %90 : vector<8x1xf32>
      %cst_38 = arith.constant 1.000000e+00 : f32
      %92 = vector.broadcast %cst_38 : f32 to vector<8x1xf32>
      %93 = arith.addf %92, %91 : vector<8x1xf32>
      %94 = math.log %93 : vector<8x1xf32>
      %95 = arith.addf %87, %94 : vector<8x1xf32>
      %cst_39 = arith.constant 3.000000e-01 : f32
      %96 = vector.broadcast %cst_39 : f32 to vector<8x1xf32>
      %97 = arith.mulf %96, %95 : vector<8x1xf32>
      %c0_40 = arith.constant 0 : index
      %c0_41 = arith.constant 0 : index
      %98 = vector.load %arg5[%c0_40, %c0_41] : memref<8x1xf32, #tpu.memory_space<vmem>>, vector<8x1xf32>
      %99 = arith.subf %85, %97 : vector<8x1xf32>
      %100 = arith.addf %98, %99 : vector<8x1xf32>
      %c0_42 = arith.constant 0 : index
      %c0_43 = arith.constant 0 : index
      %101 = vector.load %arg5[%c0_42, %c0_43] : memref<8x1xf32, #tpu.memory_space<vmem>>, vector<8x1xf32>
      tpu.vector_store %arg5[%c0_42, %c0_43], %100 {strides = array<i32>} : memref<8x1xf32, #tpu.memory_space<vmem>>, vector<8x1xf32>,
    } else {
    }
    return
  }
  func.func @transform_0(%arg0: i32, %arg1: i32) -> (i32, i32) {
    %c0_i32 = arith.constant 0 : i32
    return %arg0, %arg1 : i32, i32
  }
  func.func @transform_1(%arg0: i32, %arg1: i32) -> (i32, i32) {
    %c0_i32 = arith.constant 0 : i32
    %c0_i32_0 = arith.constant 0 : i32
    return %arg0, %c0_i32 : i32, i32
  }
  func.func @transform_2(%arg0: i32, %arg1: i32) -> (i32, i32) {
    %c0_i32 = arith.constant 0 : i32
    %c0_i32_0 = arith.constant 0 : i32
    %c0_i32_1 = arith.constant 0 : i32
    return %c0_i32, %c0_i32_0 : i32, i32
  }
  func.func @transform_3(%arg0: i32, %arg1: i32) -> (i32, i32) {
    %c0_i32 = arith.constant 0 : i32
    %c0_i32_0 = arith.constant 0 : i32
    return %arg0, %c0_i32 : i32, i32
  }
}

</mosaic_0001>

<bundles_post_ra>
// kernel: tpu_custom_call.1
= control target key start
LH: loop header
LB: loop body
LE: loop exit
PB: predicated region body
PF: predicated region fallthrough
CT: control target
= control target key end

     0   :  { %vm19_vm0 = vcmask 7168   ;;  %v117_v1 = vmov 0.0   ;;  %v44_v17 = vlaneseq  ;;  %s165_s0 = inlined_call_operand.vmem [shape: f32[8,16], index: 0, kind: input, shape index: {}]   ;;  %s166_s3 = inlined_call_operand.vmem [shape: f32[8,1], index: 3, kind: output, shape index: {}]   ;;  %s167_s2 = inlined_call_operand.<no memory space> [shape: f32[1,1], index: 2, kind: input, shape index: {}]   ;;  %s168_s1 = inlined_call_operand.vmem [shape: f32[8,1], index: 1, kind: input, shape index: {}]  }
   0x1   :  { %v22_v0 = vld [vmem:[%s165_s0] sm:$0xff]  ;;  %20 = vst.msk [vmem:[%s166_s3] sm:$0xff] %vm19_vm0, %v117_v1  ;;  %v31_v9 = vstv %s167_s2 }
   0x2   :  { %v23_v2 = vadd.f32 1.0, %v22_v0  ;;  %v45_v20 = vand.u32 127, %v44_v17  ;;  %v59_v25 = vld [vmem:[%s168_s1] sm:$0xff] }
   0x3   :  { %v60_v26 = vadd.f32 1.0, %v59_v25 }
   0x4   :  { %v24_v3 = vmul.f32 0.5, %v23_v2  ;;  %vm48_vm1 = vcmp.lt.s32.totalorder %v45_v20, 16 }
   0x5   :  { %v61_v27 = vmul.f32 0.5, %v60_v26 }
   0x6   :  { %v25_v4 = vmul.f32 %v24_v3, %v24_v3 }
   0x7   :  { %v62_v28 = vmul.f32 %v61_v27, %v61_v27 }
   0x8   :  { %v26_v5 = vmul.f32 %v25_v4, %v24_v3  ;;  %v50_v55 = vld [vmem:[%s166_s3] sm:$0xff] }
   0x9   :  { %v63_v29 = vmul.f32 %v62_v28, %v61_v27 }
   0xa   :  { %v27_v6 = vmul.f32 2.0, %v26_v5 }
   0xb   :  { %v64_v30 = vmul.f32 2.0, %v63_v29 }
   0xc   :  { %v101_v7 = vadd.f32 -1.0, %v27_v6 }
   0xd   :  { %v102_v31 = vadd.f32 -1.0, %v64_v30 }
   0xe   :  { %v29_v8 = vadd.f32 0.2, %v101_v7 }
   0xf   :  { %v103_v32 = vadd.f32 -0.2, %v102_v31  ;;  %v69_v33 = vadd.f32 0.2, %v102_v31 }
  0x10   :  { %v30_v10 = vmul.f32 32.0, %v29_v8 }
  0x11   :  { %v67_v34 = vmul.f32 32.0, %v103_v32  ;;  %v70_v35 = vmul.f32 32.0, %v69_v33 }
  0x12   :  { %v32_v11 = vadd.f32 %v31_v9, %v30_v10 }
  0x13   :  { %v68_v36 = vadd.f32 %v67_v34, %v31_v9  ;;  %v71_v37 = vadd.f32 %v70_v35, %v31_v9 }
  0x14   :  { %v34_v12 = vand.u32 2147483647, %v32_v11  ;;  %v33_v18 = vmax.f32 %v32_v11, 0.0 }
  0x15   :  { %v72_v38 = vsub.f32 0.0, %v68_v36  ;;  %v84_v39 = vand.u32 2147483647, %v71_v37  ;;  %v83_v53 = vmax.f32 %v71_v37, 0.0 }
  0x16   :  { %v35_v13 = vsub.f32 0.0, %v34_v12 }
  0x17   :  { %v74_v40 = vand.u32 2147483647, %v72_v38  ;;  %v85_v41 = vsub.f32 0.0, %v84_v39  ;;  %v73_v51 = vmax.f32 %v72_v38, 0.0 }
  0x18   :  { %v36_v14 = vmul.f32 1.442695, %v35_v13 }
  0x19   :  { %v75_v42 = vsub.f32 0.0, %v74_v40  ;;  %v86_v43 = vmul.f32 1.442695, %v85_v41 }
  0x1a   :  { %105 = vpow2.f32 %v36_v14 }
  0x1b   :  { %v76_v44 = vmul.f32 1.442695, %v75_v42 }
  0x27   :  { %v106_v15 = vpop.eup %105 }
  0x28   :  { %v38_v16 = vadd.f32 1.0, %v106_v15 }
  0x2a   :  { %107 = vlog2.f32 %v38_v16 }
  0x2b   :  { %109 = vpow2.f32 %v86_v43 }
  0x2c   :  { %111 = vpow2.f32 %v76_v44 }
  0x37   :  { %v108_v19 = vpop.eup %107 }
  0x38   :  { %v40_v21 = vmul.f32 0.6931472, %v108_v19  ;;  %v110_v45 = vpop.eup %109 }
  0x39   :  { %v112_v46 = vpop.eup %111  ;;  %v88_v47 = vadd.f32 1.0, %v110_v45 }
  0x3a   :  { %v41_v22 = vadd.f32 %v40_v21, %v33_v18  ;;  %v78_v48 = vadd.f32 1.0, %v112_v46 }
  0x3b   :  { %113 = vlog2.f32 %v88_v47 }
  0x3c   :  { %v42_v23 = vmul.f32 0.3, %v41_v22  ;;  %115 = vlog2.f32 %v78_v48 }
  0x3e   :  { %v49_v24 = vsel %vm48_vm1, %v42_v23, 0.0 }
  0x3f   :  { %51 = vadd.xlane.f32.xlu0 %v49_v24 }
  0x48   :  { %v114_v49 = vpop.eup %113 }
  0x49   :  { %v116_v50 = vpop.eup %115  ;;  %v90_v54 = vmul.f32 0.6931472, %v114_v49 }
  0x4a   :  { %v80_v52 = vmul.f32 0.6931472, %v116_v50 }
  0x4b   :  { %v91_v57 = vadd.f32 %v90_v54, %v83_v53 }
  0x4c   :  { %v81_v56 = vadd.f32 %v80_v52, %v73_v51 }
  0x4d   :  { %v92_v61 = vmul.f32 0.3, %v91_v57 }
  0x4e   :  { %v82_v60 = vmul.f32 0.7, %v81_v56 }
  0x50   :  { %v94_v62 = vsub.f32 %v82_v60, %v92_v61 }
  0xc8   :  { %v52_v58 = vpop.xlane.xlu0 %51 }
  0xc9   :  { %v53_v59 = vadd.f32 %v52_v58, %v50_v55 }
  0xcb   :  { %55 = vst.msk [vmem:[%s166_s3] sm:$0xff] %vm19_vm0, %v53_v59 }
  0xd2   :  { %v93_v63 = vld [vmem:[%s166_s3] sm:$0xff] }
  0xd3   :  { %v95_v0 = vadd.f32 %v94_v62, %v93_v63 }
  0xd5   :  { %96 = vst.msk [vmem:[%s166_s3] sm:$0xff] %vm19_vm0, %v95_v0 }

</bundles_post_ra>
